<compile_context>
chip_gen: v7x
topology: tpu7x:2x2x1
jax: 0.10.0
libtpu: 0.0.40
codegen_flags: <defaults>
</compile_context>

<pallas_src>
import functools

import jax
import jax.numpy as jnp
from jax.experimental import pallas as pl
from jax.experimental.pallas import tpu as pltpu


def _conv_block_kernel(x_ref, w_ref, b_ref, o_ref, *, leaky):
    """One batch element: out = act(W @ im2col(x) + b), lane-dense output.

    x_ref: (1, K, HO*WO)    im2col patches for this image (bf16)
    w_ref: (Cout, K)        fused weight matrix (bf16)
    b_ref: (Cout, 1)        bias column (f32)
    o_ref: (1, Cout, HO*WO) output (x dtype)
    """
    # Single MXU GEMM with K = KH*KW*Cin contraction, f32 accumulation.
    acc = jnp.dot(w_ref[...], x_ref[0],
                  preferred_element_type=jnp.float32)      # (Cout, HO*WO)
    acc = acc + b_ref[...]                                  # broadcast over lanes
    if leaky:
        acc = jnp.where(acc > 0, acc, 0.2 * acc)            # LeakyReLU(0.2)
    else:
        acc = jnp.maximum(acc, 0.0)                         # ReLU
    o_ref[0] = acc.astype(o_ref.dtype)


def conv_block(x, weight, bias, *, stride=1, padding=1, leaky=False):
    """Pallas equivalent of ConvBlock.forward with norm_type=None.

    x:      (N, Cin, H, W)        NCHW, like PyTorch
    weight: (Cout, Cin, KH, KW)   like nn.Conv2d.weight
    bias:   (Cout,)
    returns (N, Cout, HO, WO)     NCHW, like PyTorch
    """
    n, cin, h, w = x.shape
    cout, cin_w, kh, kw = weight.shape
    assert cin == cin_w, (cin, cin_w)
    ho = (h + 2 * padding - kh) // stride + 1
    wo = (w + 2 * padding - kw) // stride + 1
    howo = ho * wo
    k_total = kh * kw * cin

    # ---- layout plumbing / im2col in the wrapper (XLA side) ----
    x_pad = jnp.pad(x, ((0, 0), (0, 0),
                        (padding, padding), (padding, padding)))
    taps = []
    for i in range(kh):
        for j in range(kw):
            taps.append(
                x_pad[:, :,
                      i:i + (ho - 1) * stride + 1:stride,
                      j:j + (wo - 1) * stride + 1:stride])   # (N, Cin, HO, WO)
    # (N, KH*KW, Cin, HO, WO) -> (N, K, HO*WO); K ordering = (tap, cin).
    patches = jnp.stack(taps, axis=1).reshape(n, k_total, howo)
    patches = patches.astype(jnp.bfloat16)

    # (Cout, Cin, KH, KW) -> (Cout, KH, KW, Cin) -> (Cout, K); matches patches.
    w_mat = jnp.transpose(weight, (0, 2, 3, 1)).reshape(cout, k_total)
    w_mat = w_mat.astype(jnp.bfloat16)
    b_col = bias.reshape(cout, 1).astype(jnp.float32)

    kernel = functools.partial(_conv_block_kernel, leaky=leaky)

    flops = 2 * n * howo * k_total * cout
    bytes_accessed = (patches.size * 2 + w_mat.size * 2 + b_col.size * 4
                      + n * cout * howo * x.dtype.itemsize)

    out_flat = pl.pallas_call(
        kernel,
        out_shape=jax.ShapeDtypeStruct((n, cout, howo), x.dtype),
        grid_spec=pltpu.PrefetchScalarGridSpec(
            num_scalar_prefetch=0,
            grid=(n,),
            in_specs=[
                pl.BlockSpec((1, k_total, howo), lambda b: (b, 0, 0)),
                pl.BlockSpec((cout, k_total), lambda b: (0, 0)),
                pl.BlockSpec((cout, 1), lambda b: (0, 0)),
            ],
            out_specs=pl.BlockSpec((1, cout, howo), lambda b: (b, 0, 0)),
        ),
        compiler_params=pltpu.CompilerParams(
            dimension_semantics=("parallel",),
            vmem_limit_bytes=16 * 1024 * 1024,
        ),
        cost_estimate=pl.CostEstimate(
            flops=flops, transcendentals=0, bytes_accessed=bytes_accessed),
    )(patches, w_mat, b_col)

    # Free row-major reshape; output is already NCHW (no transpose needed).
    return out_flat.reshape(n, cout, ho, wo)


# TODO(synk): norm_type='batch' (BatchNorm2d running stats) and
# norm_type='layer' branches of ConvBlock are not implemented; only the
# default norm_type=None path (conv + bias + ReLU / LeakyReLU) is covered.


if __name__ == "__main__":
    key = jax.random.PRNGKey(0)
    kx, kkw, kb = jax.random.split(key, 3)

    # ConvBlock(n_in=4, n_out=8, n_kern=3, n_stride=1, n_pad=1) on a
    # (2, 4, 16, 16) input.
    n, cin, h, w = 2, 4, 16, 16
    cout, kern, stride, pad = 8, 3, 1, 1

    x = jax.random.normal(kx, (n, cin, h, w), dtype=jnp.float32)
    weight = 0.1 * jax.random.normal(kkw, (cout, cin, kern, kern),
                                     dtype=jnp.float32)
    bias = 0.1 * jax.random.normal(kb, (cout,), dtype=jnp.float32)

    out = conv_block(x, weight, bias, stride=stride, padding=pad, leaky=False)
    out = jax.block_until_ready(out)

    # Reference: XLA conv (highest precision) + bias + ReLU == ConvBlock
    # forward with norm_type=None, leaky=False.
    ref = jax.lax.conv_general_dilated(
        x, weight, window_strides=(stride, stride),
        padding=((pad, pad), (pad, pad)),
        dimension_numbers=("NCHW", "OIHW", "NCHW"),
        precision=jax.lax.Precision.HIGHEST)
    ref = jnp.maximum(ref + bias.reshape(1, cout, 1, 1), 0.0)

    assert out.shape == (n, cout, h, w), out.shape
    assert out.dtype == x.dtype
    # Tolerance covers bf16 MXU operands (accumulation stays f32) vs. the
    # HIGHEST-precision f32 reference.
    max_err = float(jnp.max(jnp.abs(out - ref)))
    assert jnp.allclose(out, ref, atol=2e-2, rtol=2e-2), max_err

    print("KERNEL_OK")
</pallas_src>

<mosaic_0001>
module attributes {stable_mosaic.version = 11 : i64} {
  func.func @_conv_block_kernel(%arg0: i32, %arg1: memref<1x36x256xbf16, #tpu.memory_space<vmem>>, %arg2: memref<8x36xbf16, #tpu.memory_space<vmem>>, %arg3: memref<8x1xf32, #tpu.memory_space<vmem>>, %arg4: memref<1x8x256xf32, #tpu.memory_space<vmem>>) attributes {dimension_semantics = [#tpu.dimension_semantics<parallel>], iteration_bounds = array<i64: 2>, scalar_prefetch = 0 : i64, scratch_operands = 0 : i64, tpu.core_type = #tpu.core_type<tc>, window_params = [{transform_indices = @transform_0, window_bounds = array<i64: 1, 36, 256>}, {pipeline_mode = #tpu.pipeline_mode<synchronous>, transform_indices = @transform_1, window_bounds = array<i64: 8, 36>}, {pipeline_mode = #tpu.pipeline_mode<synchronous>, transform_indices = @transform_2, window_bounds = array<i64: 8, 1>}, {transform_indices = @transform_3, window_bounds = array<i64: 1, 8, 256>}]} {
    %c0 = arith.constant 0 : index
    %c0_0 = arith.constant 0 : index
    %0 = vector.load %arg2[%c0, %c0_0] : memref<8x36xbf16, #tpu.memory_space<vmem>>, vector<8x36xbf16>
    %c0_1 = arith.constant 0 : index
    %c0_2 = arith.constant 0 : index
    %c0_3 = arith.constant 0 : index
    %1 = vector.load %arg1[%c0_1, %c0_2, %c0_3] : memref<1x36x256xbf16, #tpu.memory_space<vmem>>, vector<1x36x256xbf16>
    %2 = vector.shape_cast %1 : vector<1x36x256xbf16> to vector<36x256xbf16>
    %cst = arith.constant dense<0.000000e+00> : vector<8x256xf32>
    %3 = tpu.matmul %0, %2, %cst {dimension_numbers = #tpu.dot_dimension_numbers<[1], [0], [0], [1], [0, 0, 1, 1], [], []>} : vector<8x36xbf16>, vector<36x256xbf16>, vector<8x256xf32> -> vector<8x256xf32>
    %c0_4 = arith.constant 0 : index
    %c0_5 = arith.constant 0 : index
    %4 = vector.load %arg3[%c0_4, %c0_5] : memref<8x1xf32, #tpu.memory_space<vmem>>, vector<8x1xf32>
    %5 = vector.broadcast %4 : vector<8x1xf32> to vector<8x256xf32>
    %6 = arith.addf %3, %5 : vector<8x256xf32>
    %cst_6 = arith.constant 0.000000e+00 : f32
    %7 = vector.broadcast %cst_6 : f32 to vector<8x256xf32>
    %8 = arith.maximumf %6, %7 : vector<8x256xf32>
    %c0_7 = arith.constant 0 : index
    %c0_8 = arith.constant 0 : index
    %c0_9 = arith.constant 0 : index
    %9 = vector.load %arg4[%c0_7, %c0_8, %c0_9] : memref<1x8x256xf32, #tpu.memory_space<vmem>>, vector<1x8x256xf32>
    %10 = vector.shape_cast %9 : vector<1x8x256xf32> to vector<8x256xf32>
    %11 = vector.shape_cast %8 : vector<8x256xf32> to vector<1x8x256xf32>
    tpu.vector_store %arg4[%c0_7, %c0_8, %c0_9], %11 {strides = array<i32>} : memref<1x8x256xf32, #tpu.memory_space<vmem>>, vector<1x8x256xf32>,
    return
  }
  func.func @transform_0(%arg0: i32) -> (i32, i32, i32) {
    %c0_i32 = arith.constant 0 : i32
    %c0_i32_0 = arith.constant 0 : i32
    %c0_i32_1 = arith.constant 0 : i32
    return %arg0, %c0_i32, %c0_i32_0 : i32, i32, i32
  }
  func.func @transform_1(%arg0: i32) -> (i32, i32) {
    %c0_i32 = arith.constant 0 : i32
    %c0_i32_0 = arith.constant 0 : i32
    %c0_i32_1 = arith.constant 0 : i32
    return %c0_i32, %c0_i32_0 : i32, i32
  }
  func.func @transform_2(%arg0: i32) -> (i32, i32) {
    %c0_i32 = arith.constant 0 : i32
    %c0_i32_0 = arith.constant 0 : i32
    %c0_i32_1 = arith.constant 0 : i32
    return %c0_i32, %c0_i32_0 : i32, i32
  }
  func.func @transform_3(%arg0: i32) -> (i32, i32, i32) {
    %c0_i32 = arith.constant 0 : i32
    %c0_i32_0 = arith.constant 0 : i32
    %c0_i32_1 = arith.constant 0 : i32
    return %arg0, %c0_i32, %c0_i32_0 : i32, i32, i32
  }
}

</mosaic_0001>

<bundles_post_ra>
// kernel: tpu_custom_call.1
= control target key start
LH: loop header
LB: loop body
LE: loop exit
PB: predicated region body
PF: predicated region fallthrough
CT: control target
= control target key end

     0   :  { %8 = vsyncpa [#allocation3], 0  ;;  %s599_s0 = inlined_call_operand.vmem [shape: bf16[2,36,256], index: 0, kind: input, shape index: {}]   ;;  %s600_s1 = inlined_call_operand.vmem [shape: bf16[8,36], index: 1, kind: input, shape index: {}]   ;;  %s601_s2 = inlined_call_operand.vmem [shape: f32[8,1], index: 2, kind: input, shape index: {}]   ;;  %s602_s3 = inlined_call_operand.hbm [shape: f32[2,8,256], index: 3, kind: output, shape index: {}]  }
   0x1   :  { %10 = vsyncpa [#allocation3 + $0x1], 0  ;;  %s493_s12 = smov 0   ;;  %s495_s13 = smov 0  }
   0x2   :  { %s497_s14 = smov 0   ;;  %s499_s15 = smov 0  }
   0x3 LB: > { %s514_s16 = sadd.s32 4294967295, %s469_s15   ;;  %s337_s17 = sadd.s32 4294967294, %s469_s15   ;;  %s469_s15 = sphi %s499_s15, %s608_s15   ;;  %s465_s14 = sphi %s497_s14, %s607_s14   ;;  %s461_s13 = sphi %s495_s13, %s606_s13   ;;  %s457_s12 = sphi %s493_s12, %s605_s12  }
   0x4   : > { %s518_s18 = sadd.s32 1, %s469_s15   ;;  %s91_s19 = sadd.s32 1, %s465_s14 }
   0x5   : > { %s88_s20 = ssub.s32 %s469_s15, %s518_s18  ;;  %p101_p0 = scmp.ne.s32.totalorder %s465_s14, %s461_s13 }
   0x6   : > { %p89_p1 = scmp.eq.s32.totalorder %s88_s20, 0  ;;  %p102_p2 = scmp.eq.s32.totalorder %s514_s16, 1 }
   0x7   : > { %p107_p3 = scmp.ne.s32.totalorder %s461_s13, %s457_s12  ;;  %p108_p4 = scmp.eq.s32.totalorder %s337_s17, 1 }
   0x8   : > { %s529_s21 = scalar_select %p89_p1, %s465_s14, %s91_s19  }
   0x9   : > { %p531_p5 = por %p102_p2, %p101_p0  ;;  %p535_p6 = por %p108_p4, %p107_p3 }
   0xa   : > { %p340_p7 = scmp.ge.s32.totalorder %s469_s15, 1  ;;  %p140_p8 = scmp.lt.s32.totalorder %s469_s15, 3 }
   0xc   : > { %p141_p9 = pnand %p340_p7, %p140_p8 }
   0xd   : > { %p164_p10 = scmp.lt.s32.totalorder (!%p141_p9), %s514_s16, 1  ;;  %v471_v0 = vmov (!%p141_p9), 0   ;;  %v176_v1 = vld [vmem:[%s601_s2] sm:$0xff] (!%p141_p9)  ;;  %vm211_vm0 = vcmask (!%p141_p9), 1041408   ;;  %vm207_vm1 = vcmask (!%p141_p9), 293888   ;;  %s161_s6 = sand.u32 (!%p141_p9), 1, %s461_s13  }
   0xe   : > { %144 = sbr.rel (%p141_p9) target bundleno = 270 (0x10e), region = 32  ;;  %250 = vmatprep.mubr.bf16.mxu0 (!%p141_p9), %v471_v0  ;;  %398 = vset.pattern.permute.xlu0 (!%p141_p9), %v471_v0  ;;  %v170_v10 = vld [vmem:[%s600_s1] sm:$0xf] (!%p141_p9)  ;;  %s341_s7 = sshll.u32 (!%p141_p9), %s161_s6, 4 }
   0xf   : > { %179 = vperm.xlu0 (!%p141_p9), %398, %v176_v1   ;;  %s356_s8 = sshll.u32 (!%p141_p9), %s514_s16, 8  ;;  %s163_s9 = scalar_lea.vmem (!%p141_p9), [#allocation2], %s341_s7 }
  0x10   : > { %s278_s10 = sshll.u32 (!%p141_p9), %s163_s9, 4  ;;  %s557_s19 = scalar_lea.hbm (!%p141_p9), %s602_s3, %s356_s8  ;;  %s559_s10 = int_to_ptr.vmem [resolvable:$true] %s278_s10 }
  0x11   : > { %s407_s20 = scalar_lea.vmem (!%p141_p9), %s559_s10, 256  ;;  %s472_s24 = smov (!%p141_p9), [#allocation2]  }
  0x12   : > { %p408_p11 = scmp.ne.s32.totalorder (!%p141_p9), %s559_s10, %s407_s20  ;;  %s411_s25 = sshll.u32 (!%p141_p9), %s472_s24, 4  ;;  %s412_s25 = int_to_ptr.vmem [resolvable:$false] %s411_s25 }
  0x13   : > { %p414_p0 = scmp.lt.s32.totalorder (!%p141_p9), %s559_s10, %s412_s25 }
  0x14   : > { %p409_p12 = pnand (!%p141_p9), %p408_p11, %p531_p5 }
  0x15   : > { %s165_s26 = scalar_select %p164_p10, %s514_s16, 1 }
  0x16   : > { %s264_s16 = scalar_lea.sflag [#allocation3], %s161_s6  ;;  %p410_p13 = pneg %p409_p12 }
  0x17   : > { %s357_s27 = smul.u32 40, %s165_s26  ;;  %s413_s26 = scalar_lea.vmem %s412_s25, 512 }
  0x18   : > { %p415_p1 = scmp.lt.s32.totalorder %s413_s26, %s407_s20 }
  0x19   : > { %s168_s30 = scalar_lea.vmem %s599_s0, %s357_s27 }
  0x1a   : > { %v399_v2 = vld [vmem:[%s168_s30 + $0x4] ss:$8 sps:$4 sm:$0xff]   ;;  %v401_v3 = vld [vmem:[%s168_s30] ss:$8 sps:$4 sm:$0xff]   ;;  %v402_v4 = vld [vmem:[%s168_s30 + $0x14] ss:$8 sps:$4 sm:$0xff]   ;;  %p416_p2 = por %p415_p1, %p414_p0 }
  0x1b   : > { %218 = vmatprep.subr.bf16.mxu0 %v399_v2  ;;  %v175_v5 = vld [vmem:[%s168_s30 + $0x20] sm:$0x33]  ;;  %v404_v6 = vld [vmem:[%s168_s30 + $0x10] ss:$8 sps:$4 sm:$0xff]  }
  0x1c   : > { %219 = vmatpush1.bf16.msra.mxu0 %v401_v3  ;;  %v348_v7 = vcombine.high %v175_v5, %v175_v5  ;;  %v347_v8 = vcombine.low %v175_v5, %v175_v5  ;;  %p417_p3 = pnand %p416_p2, %p410_p13 }
  0x1d   : > { %220 = vmatprep.subr.bf16.mxu0 %v402_v4 }
  0x1e   : > { %v213_v9 = vsel %vm211_vm0, %v347_v8, 0 }
  0x20   : > { %221 = vmatpush1.bf16.msra.mxu0 %v404_v6 }
  0x21   : > { %349 = vmatprep.subr.msk.bf16.mxu0 %vm211_vm0, %v348_v7 }
  0x24   : > { %223 = vmatpush1.bf16.msra.mxu0 %v213_v9 }
  0x27   : > { %350 = vmatmul.mubr.msk.bf16.vlgmr.msra.gmra.mrb[0].mxu0 %vm207_vm1, %v170_v10 }
  0x8e   : > { %v180_v11 = vpop.permute.xlu0 %179 }
  0xfa   : > { %v252_v12 = vpop.f32.mrb[0].mxu0 }
  0xfb   : > { %v253_v13 = vadd.f32 %v252_v12, %v180_v11  ;;  %v254_v14 = vpop.f32.mrb[1].mxu0 }
  0xfc   : > { %v255_v15 = vadd.f32 %v254_v14, %v180_v11  ;;  %v256_v16 = vpop.f32.mrb[2].mxu0 }
  0xfd   : > { %v259_v17 = vmax.f32 %v253_v13, 0.0  ;;  %v257_v18 = vpop.f32.mrb[3].mxu0 }
  0xfe   : > { %v260_v19 = vmax.f32 %v255_v15, 0.0 }
  0xff   : > { %261 = vst [vmem:[%s163_s9] sm:$0xff] %v259_v17 }
 0x100   : > { %262 = vst [vmem:[%s163_s9 + $0x8] sm:$0xff] %v260_v19 }
 0x101   : > { %420 = shalt.err (!%p417_p3)
}
 0x102   : > { %s421_s27 = scalar_lea.hbm %s557_s19, 256  ;;  %s425_s30 = scalar_lea.hbm %s602_s3, 512 }
 0x103   : > { %p422_p4 = scmp.ne.s32.totalorder %s557_s19, %s421_s27  ;;  %p426_p9 = scmp.lt.u32.totalorder %s557_s19, %s602_s3 }
 0x104   : > { %p427_p10 = scmp.lt.u32.totalorder %s425_s30, %s421_s27  ;;  %p429_p12 = scmp.lt.u32.totalorder %s421_s27, %s557_s19 }
 0x105   : > { %p423_p7 = pnand %p422_p4, %p531_p5 }
 0x106   : > { %p428_p11 = por %p427_p10, %p426_p9 }
 0x107   : > { %p424_p8 = pneg %p423_p7 }
 0x108   : > { %p430_p13 = por %p429_p12, %p428_p11 }
 0x10a   : > { %p431_p0 = pnand %p430_p13, %p424_p8 }
 0x10c   : > { %434 = shalt.err (!%p431_p0)
}
 0x10d   : > { %358 = dma.vmem_to_hbm [thread:$0]  (%p531_p5), %s559_s10, 256, %s557_s19, %s264_s16  }
 0x10e PF: > { %p364_p1 = scmp.ge.s32.totalorder %s469_s15, 2  ;;  %s290_s6 = sand.u32 1, %s457_s12  }
 0x10f   : > { %s291_s7 = scalar_lea.sflag [#allocation3], %s290_s6 }
 0x110   : > { %p361_p2 = pnand %p364_p1, %p535_p6 }
 0x112   : > { %452 = dma.done.wait (!%p361_p2), %s291_s7, 256  }
 0x113   : > { %454 = vsyncadd (!%p361_p2), %s291_s7, 4294967040  ;;  %p13_p3 = scmp.ge.s32.totalorder %s518_s18, 4   ;;  %s605_s12 = smov %s461_s13 }
 0x114   : > { %s606_s13 = smov %s465_s14  ;;  %s607_s14 = smov %s529_s21 }
 0x115   : > { %s608_s15 = smov %s518_s18  ;;  %15 = sbr.rel (!%p13_p3) target bundleno = 3 (0x3), region = 67 }
 0x11c   :  { %296 = vsyncpa [#allocation3], 1 }
 0x11d   :  { %298 = vsyncpa [#allocation3 + $0x1], 1 }

</bundles_post_ra>
